<compile_context>
chip_gen: v7x
topology: tpu7x:2x2x1
jax: 0.10.0
libtpu: 0.0.40
codegen_flags: <defaults>
</compile_context>

<pallas_src>
import functools

import jax
import jax.numpy as jnp
from jax.experimental import pallas as pl
from jax.experimental.pallas import tpu as pltpu

GIN_EPS = 0.0   # GINConv eps
BN_EPS = 1e-5   # BatchNorm1d eps
LANE = 128      # lane width
SUBLANE = 8     # sublane width


def _round_up(x, m):
    return (x + m - 1) // m * m


# ---------------------------------------------------------------------------
# Pallas kernels
# ---------------------------------------------------------------------------
def _gin_conv_kernel(*refs, has_wres):
    """One fused GIN_Conv layer on a row-tile of nodes.

    aggregate (adj @ x) + (1+eps)*x  ->  Linear1(+BN folded) -> PReLU
                                     ->  Linear2(+BN folded) -> PReLU
                                     ->  + residual(x)
    """
    if has_wres:
        (adj_ref, xf_ref, xt_ref, w1_ref, b1_ref, w2_ref, b2_ref,
         wres_ref, a_ref, out_ref) = refs
    else:
        (adj_ref, xf_ref, xt_ref, w1_ref, b1_ref, w2_ref, b2_ref,
         a_ref, out_ref) = refs
        wres_ref = None

    x_tile = xt_ref[...]                                        # (TM, Din) f32

    # GINConv(nn.Identity()):  h_i = (1 + eps) * x_i + sum_{j in N(i)} x_j
    # Aggregation as a bf16 MXU matmul over the full (resident) node features.
    agg = jnp.dot(adj_ref[...], xf_ref[...],
                  preferred_element_type=jnp.float32)
    h = (1.0 + GIN_EPS) * x_tile + agg                          # f32

    # Linear1 (BatchNorm1d folded into W/b) -> PReLU
    o = jnp.dot(h.astype(jnp.bfloat16), w1_ref[...],
                preferred_element_type=jnp.float32) + b1_ref[...]
    a1 = a_ref[0]
    o = jnp.where(o >= 0.0, o, a1 * o)

    # Linear2 (BatchNorm1d folded) -> PReLU
    o = jnp.dot(o.astype(jnp.bfloat16), w2_ref[...],
                preferred_element_type=jnp.float32) + b2_ref[...]
    a2 = a_ref[1]
    o = jnp.where(o >= 0.0, o, a2 * o)

    # Residual: identity -> free VPU add; else bias-free Linear on the MXU.
    if has_wres:
        o = o + jnp.dot(x_tile.astype(jnp.bfloat16), wres_ref[...],
                        preferred_element_type=jnp.float32)
    else:
        o = o + x_tile

    out_ref[...] = o


def _log_softmax_kernel(x_ref, out_ref):
    x = x_ref[...]
    m = jnp.max(x, axis=-1, keepdims=True)
    e = jnp.exp(x - m)
    s = jnp.sum(e, axis=-1, keepdims=True)
    out_ref[...] = x - m - jnp.log(s)


# ---------------------------------------------------------------------------
# Wrappers around pallas_call
# ---------------------------------------------------------------------------
def _layer_vmem_bytes(tile_m, n_pad, d_in, d_hid, d_out, has_wres):
    bf, f = 2, 4
    b = 2 * tile_m * n_pad * bf            # adj row-tile, double-buffered
    b += n_pad * d_in * bf                 # full x (grid-invariant, resident)
    b += 2 * tile_m * d_in * f             # x row-tile (f32), double-buffered
    b += d_in * d_hid * bf + d_hid * f     # w1 + b1
    b += d_hid * d_out * bf + d_out * f    # w2 + b2
    if has_wres:
        b += d_in * d_out * bf
    b += 2 * tile_m * d_out * f            # output tile, double-buffered
    return b


def gin_conv_layer(adj_bf, x_bf, x_f32, layer, tile_m):
    """adj_bf: (N_pad, N_pad) bf16, x_bf: (N_pad, Din) bf16, x_f32: (N_pad, Din) f32."""
    n_pad = adj_bf.shape[0]
    d_in = x_bf.shape[1]
    d_hid = layer["w1"].shape[1]
    d_out = layer["w2"].shape[1]
    has_wres = layer["wres"] is not None
    grid = (n_pad // tile_m,)

    in_specs = [
        pl.BlockSpec((tile_m, n_pad), lambda i: (i, 0)),   # adj row-tile
        pl.BlockSpec((n_pad, d_in), lambda i: (0, 0)),     # x full (bf16)
        pl.BlockSpec((tile_m, d_in), lambda i: (i, 0)),    # x row-tile (f32)
        pl.BlockSpec((d_in, d_hid), lambda i: (0, 0)),     # w1 (BN folded, bf16)
        pl.BlockSpec((1, d_hid), lambda i: (0, 0)),        # b1 (f32)
        pl.BlockSpec((d_hid, d_out), lambda i: (0, 0)),    # w2 (bf16)
        pl.BlockSpec((1, d_out), lambda i: (0, 0)),        # b2 (f32)
    ]
    args = [adj_bf, x_bf, x_f32,
            layer["w1"], layer["b1"], layer["w2"], layer["b2"]]
    if has_wres:
        in_specs.append(pl.BlockSpec((d_in, d_out), lambda i: (0, 0)))
        args.append(layer["wres"])
    in_specs.append(pl.BlockSpec(memory_space=pltpu.MemorySpace.SMEM))  # PReLU alphas
    args.append(layer["a"])

    needed = _layer_vmem_bytes(tile_m, n_pad, d_in, d_hid, d_out, has_wres)
    # headroom, but stay below v7x's 64 MiB physical VMEM
    vmem_limit = int(min(max(2 * needed + (1 << 20), 32 << 20), 60 << 20))

    return pl.pallas_call(
        functools.partial(_gin_conv_kernel, has_wres=has_wres),
        out_shape=jax.ShapeDtypeStruct((n_pad, d_out), jnp.float32),
        grid=grid,
        in_specs=in_specs,
        out_specs=pl.BlockSpec((tile_m, d_out), lambda i: (i, 0)),
        compiler_params=pltpu.CompilerParams(
            dimension_semantics=("parallel",),
            vmem_limit_bytes=vmem_limit),
    )(*args)


def log_softmax_rows(x):
    # TODO(synk): could be fused into the last layer's epilogue; kept as a tiny
    # standalone kernel since its cost is negligible at these shapes.
    vmem = pl.BlockSpec(memory_space=pltpu.MemorySpace.VMEM)
    return pl.pallas_call(
        _log_softmax_kernel,
        out_shape=jax.ShapeDtypeStruct(x.shape, jnp.float32),
        in_specs=[vmem],
        out_specs=vmem,
    )(x)


# ---------------------------------------------------------------------------
# Parameter construction (deterministic, mirrors the PyTorch __init__ shapes),
# with eval-mode BatchNorm folded into the Linear weights, feature dims padded
# to 128 lanes, and matmul operands cast to bf16.
# ---------------------------------------------------------------------------
def _fold_bn_into_linear(w, b, gamma, beta, mean, var):
    s = gamma / jnp.sqrt(var + BN_EPS)
    return w * s[None, :], b * s + (beta - mean * s)


def _pad2(a, rows, cols):
    return jnp.pad(a, ((0, rows - a.shape[0]), (0, cols - a.shape[1])))


def _init_gin_conv(key, d_in, d_hid, d_out, d_in_pad, d_hid_pad, d_out_pad):
    k1, k2, k3, k4, k5 = jax.random.split(key, 5)
    # nn.Linear-style uniform init with bound 1/sqrt(fan_in)
    bound1 = 1.0 / d_in ** 0.5
    w1 = jax.random.uniform(k1, (d_in, d_hid), jnp.float32, -bound1, bound1)
    b1 = jax.random.uniform(k2, (d_hid,), jnp.float32, -bound1, bound1)
    bound2 = 1.0 / d_hid ** 0.5
    w2 = jax.random.uniform(k3, (d_hid, d_out), jnp.float32, -bound2, bound2)
    b2 = jax.random.uniform(k4, (d_out,), jnp.float32, -bound2, bound2)

    # BatchNorm1d defaults (gamma=1, beta=0, running mean=0, var=1), folded for
    # eval mode.  TODO(synk): re-fold if running stats change during training.
    w1f, b1f = _fold_bn_into_linear(w1, b1, jnp.ones(d_hid), jnp.zeros(d_hid),
                                    jnp.zeros(d_hid), jnp.ones(d_hid))
    w2f, b2f = _fold_bn_into_linear(w2, b2, jnp.ones(d_out), jnp.zeros(d_out),
                                    jnp.zeros(d_out), jnp.ones(d_out))

    # Residual: Identity if d_in == d_out (plain add in-kernel), else bias-free Linear.
    if d_in == d_out:
        wres = None
    else:
        wres = jax.random.uniform(k5, (d_in, d_out), jnp.float32, -bound1, bound1)
        wres = _pad2(wres, d_in_pad, d_out_pad).astype(jnp.bfloat16)

    return dict(
        w1=_pad2(w1f, d_in_pad, d_hid_pad).astype(jnp.bfloat16),
        b1=_pad2(b1f[None, :], 1, d_hid_pad),
        w2=_pad2(w2f, d_hid_pad, d_out_pad).astype(jnp.bfloat16),
        b2=_pad2(b2f[None, :], 1, d_out_pad),
        wres=wres,
        a=jnp.array([0.25, 0.25], jnp.float32),   # PReLU default params
    )


def init_gin_np(key, node_dict_size, node_dim, hidden_dim, layer_number=3):
    d_node = _round_up(node_dim, LANE)
    d_hid = _round_up(hidden_dim, LANE)
    d_cls = _round_up(node_dict_size, LANE)
    keys = jax.random.split(key, layer_number + 3)
    # initialize_parameters(): normal(0, embedding_dim ** -0.5), zero-padded lanes
    embedding = jax.random.normal(keys[0], (node_dict_size, node_dim),
                                  jnp.float32) * node_dim ** (-0.5)
    embedding = _pad2(embedding, node_dict_size, d_node)

    layers = [_init_gin_conv(keys[1], node_dim, hidden_dim, hidden_dim,
                             d_node, d_hid, d_hid)]
    for i in range(layer_number):
        layers.append(_init_gin_conv(keys[2 + i], hidden_dim, hidden_dim,
                                     hidden_dim, d_hid, d_hid, d_hid))
    layers.append(_init_gin_conv(keys[-1], hidden_dim, hidden_dim,
                                 node_dict_size, d_hid, d_hid, d_cls))
    return dict(embedding=embedding, layers=layers)


# ---------------------------------------------------------------------------
# Full forward pass (eval mode)
# ---------------------------------------------------------------------------
@functools.partial(jax.jit, static_argnames=("num_nodes", "output_embedding"))
def gin_np_forward(params, node_ids, edge_index, mask_x_position,
                   num_nodes, output_embedding=False):
    num_classes = params["embedding"].shape[0]

    # Embedding lookup + squeeze(1)  (glue)
    x = jnp.take(params["embedding"], node_ids[:, 0], axis=0)   # (N, Dpad) f32

    # Row tile & node padding (sublane / tile aligned).
    tile_m = min(256, _round_up(num_nodes, SUBLANE))
    n_pad = _round_up(num_nodes, tile_m)
    x = jnp.pad(x, ((0, n_pad - num_nodes), (0, 0)))

    # Dense adjacency from edge_index: adj[dst, src] += 1  (glue).
    # TODO(synk): for large sparse graphs, replace with a CSR scalar-prefetch
    # gather-accumulate kernel instead of the dense O(N^2) adjacency.
    adj = jnp.zeros((n_pad, n_pad), jnp.float32)
    adj = adj.at[edge_index[1], edge_index[0]].add(1.0)
    adj_bf = adj.astype(jnp.bfloat16)   # exact for edge multiplicities <= 256

    for layer_params in params["layers"]:
        # TODO(synk): F.dropout is identity in eval mode; training-mode masking omitted.
        x = gin_conv_layer(adj_bf, x.astype(jnp.bfloat16), x, layer_params, tile_m)

    if output_embedding:
        return jnp.mean(x[:num_nodes, :num_classes], axis=0, keepdims=True)

    masked = jnp.take(x, mask_x_position, axis=0)[:, :num_classes]
    return log_softmax_rows(masked)


# ---------------------------------------------------------------------------
if __name__ == "__main__":
    node_dict_size = 16
    node_dim = 32
    hidden_dim = 32
    layer_number = 3
    num_nodes = 12
    num_edges = 24

    key = jax.random.PRNGKey(0)
    kp, kn, ke, km = jax.random.split(key, 4)

    params = init_gin_np(kp, node_dict_size, node_dim, hidden_dim, layer_number)

    node_ids = jax.random.randint(kn, (num_nodes, 1), 0, node_dict_size,
                                  dtype=jnp.int32)
    edge_index = jax.random.randint(ke, (2, num_edges), 0, num_nodes,
                                    dtype=jnp.int32)
    mask_x_position = jnp.array([0, 3, 7, 10], dtype=jnp.int32)

    out = gin_np_forward(params, node_ids, edge_index, mask_x_position,
                         num_nodes=num_nodes, output_embedding=False)
    out = jax.block_until_ready(out)

    assert out.shape == (mask_x_position.shape[0], node_dict_size)
    # rows of log_softmax must sum (in prob space) to 1
    assert bool(jnp.allclose(jnp.sum(jnp.exp(out), axis=-1), 1.0, atol=1e-4))
    print("KERNEL_OK")
</pallas_src>

<mosaic_0001>
module attributes {stable_mosaic.version = 11 : i64} {
  func.func @_gin_conv_kernel(%arg0: i32, %arg1: memref<16x16xbf16, #tpu.memory_space<vmem>>, %arg2: memref<16x128xbf16, #tpu.memory_space<vmem>>, %arg3: memref<16x128xf32, #tpu.memory_space<vmem>>, %arg4: memref<128x128xbf16, #tpu.memory_space<vmem>>, %arg5: memref<1x128xf32, #tpu.memory_space<vmem>>, %arg6: memref<128x128xbf16, #tpu.memory_space<vmem>>, %arg7: memref<1x128xf32, #tpu.memory_space<vmem>>, %arg8: memref<2xf32, #tpu.memory_space<smem>>, %arg9: memref<16x128xf32, #tpu.memory_space<vmem>>) attributes {dimension_semantics = [#tpu.dimension_semantics<parallel>], iteration_bounds = array<i64: 1>, scalar_prefetch = 0 : i64, scratch_operands = 0 : i64, tpu.core_type = #tpu.core_type<tc>, window_params = [{transform_indices = @transform_0, window_bounds = array<i64: 16, 16>}, {pipeline_mode = #tpu.pipeline_mode<synchronous>, transform_indices = @transform_1, window_bounds = array<i64: 16, 128>}, {transform_indices = @transform_2, window_bounds = array<i64: 16, 128>}, {pipeline_mode = #tpu.pipeline_mode<synchronous>, transform_indices = @transform_3, window_bounds = array<i64: 128, 128>}, {pipeline_mode = #tpu.pipeline_mode<synchronous>, transform_indices = @transform_4, window_bounds = array<i64: 1, 128>}, {pipeline_mode = #tpu.pipeline_mode<synchronous>, transform_indices = @transform_5, window_bounds = array<i64: 128, 128>}, {pipeline_mode = #tpu.pipeline_mode<synchronous>, transform_indices = @transform_6, window_bounds = array<i64: 1, 128>}, {transform_indices = @transform_7, window_bounds = array<i64: 2>}, {transform_indices = @transform_8, window_bounds = array<i64: 16, 128>}]} {
    %c0 = arith.constant 0 : index
    %c0_0 = arith.constant 0 : index
    %0 = vector.load %arg3[%c0, %c0_0] : memref<16x128xf32, #tpu.memory_space<vmem>>, vector<16x128xf32>
    %c0_1 = arith.constant 0 : index
    %c0_2 = arith.constant 0 : index
    %1 = vector.load %arg1[%c0_1, %c0_2] : memref<16x16xbf16, #tpu.memory_space<vmem>>, vector<16x16xbf16>
    %c0_3 = arith.constant 0 : index
    %c0_4 = arith.constant 0 : index
    %2 = vector.load %arg2[%c0_3, %c0_4] : memref<16x128xbf16, #tpu.memory_space<vmem>>, vector<16x128xbf16>
    %cst = arith.constant dense<0.000000e+00> : vector<16x128xf32>
    %3 = tpu.matmul %1, %2, %cst {dimension_numbers = #tpu.dot_dimension_numbers<[1], [0], [0], [1], [0, 0, 1, 1], [], []>} : vector<16x16xbf16>, vector<16x128xbf16>, vector<16x128xf32> -> vector<16x128xf32>
    %cst_5 = arith.constant 1.000000e+00 : f32
    %4 = vector.broadcast %cst_5 : f32 to vector<16x128xf32>
    %5 = arith.mulf %4, %0 : vector<16x128xf32>
    %6 = arith.addf %5, %3 : vector<16x128xf32>
    %7 = arith.truncf %6 : vector<16x128xf32> to vector<16x128xbf16>
    %c0_6 = arith.constant 0 : index
    %c0_7 = arith.constant 0 : index
    %8 = vector.load %arg4[%c0_6, %c0_7] : memref<128x128xbf16, #tpu.memory_space<vmem>>, vector<128x128xbf16>
    %cst_8 = arith.constant dense<0.000000e+00> : vector<16x128xf32>
    %9 = tpu.matmul %7, %8, %cst_8 {dimension_numbers = #tpu.dot_dimension_numbers<[1], [0], [0], [1], [0, 0, 1, 1], [], []>} : vector<16x128xbf16>, vector<128x128xbf16>, vector<16x128xf32> -> vector<16x128xf32>
    %c0_9 = arith.constant 0 : index
    %c0_10 = arith.constant 0 : index
    %10 = vector.load %arg5[%c0_9, %c0_10] : memref<1x128xf32, #tpu.memory_space<vmem>>, vector<1x128xf32>
    %11 = vector.broadcast %10 : vector<1x128xf32> to vector<16x128xf32>
    %12 = arith.addf %9, %11 : vector<16x128xf32>
    %c0_11 = arith.constant 0 : index
    %13 = memref.load %arg8[%c0_11] : memref<2xf32, #tpu.memory_space<smem>>
    %cst_12 = arith.constant 0.000000e+00 : f32
    %14 = vector.broadcast %cst_12 : f32 to vector<16x128xf32>
    %15 = arith.cmpf oge, %12, %14 : vector<16x128xf32>
    %16 = vector.broadcast %13 : f32 to vector<16x128xf32>
    %17 = arith.mulf %16, %12 : vector<16x128xf32>
    %18 = arith.select %15, %12, %17 : vector<16x128xi1>, vector<16x128xf32>
    %19 = arith.truncf %18 : vector<16x128xf32> to vector<16x128xbf16>
    %c0_13 = arith.constant 0 : index
    %c0_14 = arith.constant 0 : index
    %20 = vector.load %arg6[%c0_13, %c0_14] : memref<128x128xbf16, #tpu.memory_space<vmem>>, vector<128x128xbf16>
    %cst_15 = arith.constant dense<0.000000e+00> : vector<16x128xf32>
    %21 = tpu.matmul %19, %20, %cst_15 {dimension_numbers = #tpu.dot_dimension_numbers<[1], [0], [0], [1], [0, 0, 1, 1], [], []>} : vector<16x128xbf16>, vector<128x128xbf16>, vector<16x128xf32> -> vector<16x128xf32>
    %c0_16 = arith.constant 0 : index
    %c0_17 = arith.constant 0 : index
    %22 = vector.load %arg7[%c0_16, %c0_17] : memref<1x128xf32, #tpu.memory_space<vmem>>, vector<1x128xf32>
    %23 = vector.broadcast %22 : vector<1x128xf32> to vector<16x128xf32>
    %24 = arith.addf %21, %23 : vector<16x128xf32>
    %c1 = arith.constant 1 : index
    %25 = memref.load %arg8[%c1] : memref<2xf32, #tpu.memory_space<smem>>
    %cst_18 = arith.constant 0.000000e+00 : f32
    %26 = vector.broadcast %cst_18 : f32 to vector<16x128xf32>
    %27 = arith.cmpf oge, %24, %26 : vector<16x128xf32>
    %28 = vector.broadcast %25 : f32 to vector<16x128xf32>
    %29 = arith.mulf %28, %24 : vector<16x128xf32>
    %30 = arith.select %27, %24, %29 : vector<16x128xi1>, vector<16x128xf32>
    %31 = arith.addf %30, %0 : vector<16x128xf32>
    %c0_19 = arith.constant 0 : index
    %c0_20 = arith.constant 0 : index
    %32 = vector.load %arg9[%c0_19, %c0_20] : memref<16x128xf32, #tpu.memory_space<vmem>>, vector<16x128xf32>
    tpu.vector_store %arg9[%c0_19, %c0_20], %31 {strides = array<i32>} : memref<16x128xf32, #tpu.memory_space<vmem>>, vector<16x128xf32>,
    return
  }
  func.func @transform_0(%arg0: i32) -> (i32, i32) {
    %c0_i32 = arith.constant 0 : i32
    %c0_i32_0 = arith.constant 0 : i32
    return %arg0, %c0_i32 : i32, i32
  }
  func.func @transform_1(%arg0: i32) -> (i32, i32) {
    %c0_i32 = arith.constant 0 : i32
    %c0_i32_0 = arith.constant 0 : i32
    %c0_i32_1 = arith.constant 0 : i32
    return %c0_i32, %c0_i32_0 : i32, i32
  }
  func.func @transform_2(%arg0: i32) -> (i32, i32) {
    %c0_i32 = arith.constant 0 : i32
    %c0_i32_0 = arith.constant 0 : i32
    return %arg0, %c0_i32 : i32, i32
  }
  func.func @transform_3(%arg0: i32) -> (i32, i32) {
    %c0_i32 = arith.constant 0 : i32
    %c0_i32_0 = arith.constant 0 : i32
    %c0_i32_1 = arith.constant 0 : i32
    return %c0_i32, %c0_i32_0 : i32, i32
  }
  func.func @transform_4(%arg0: i32) -> (i32, i32) {
    %c0_i32 = arith.constant 0 : i32
    %c0_i32_0 = arith.constant 0 : i32
    %c0_i32_1 = arith.constant 0 : i32
    return %c0_i32, %c0_i32_0 : i32, i32
  }
  func.func @transform_5(%arg0: i32) -> (i32, i32) {
    %c0_i32 = arith.constant 0 : i32
    %c0_i32_0 = arith.constant 0 : i32
    %c0_i32_1 = arith.constant 0 : i32
    return %c0_i32, %c0_i32_0 : i32, i32
  }
  func.func @transform_6(%arg0: i32) -> (i32, i32) {
    %c0_i32 = arith.constant 0 : i32
    %c0_i32_0 = arith.constant 0 : i32
    %c0_i32_1 = arith.constant 0 : i32
    return %c0_i32, %c0_i32_0 : i32, i32
  }
  func.func @transform_7(%arg0: i32) -> i32 {
    %c0_i32 = arith.constant 0 : i32
    %c0_i32_0 = arith.constant 0 : i32
    return %c0_i32 : i32
  }
  func.func @transform_8(%arg0: i32) -> (i32, i32) {
    %c0_i32 = arith.constant 0 : i32
    %c0_i32_0 = arith.constant 0 : i32
    return %arg0, %c0_i32 : i32, i32
  }
}

module attributes {stable_mosaic.version = 11 : i64} {
  func.func @_gin_conv_kernel(%arg0: i32, %arg1: memref<16x16xbf16, #tpu.memory_space<vmem>>, %arg2: memref<16x128xbf16, #tpu.memory_space<vmem>>, %arg3: memref<16x128xf32, #tpu.memory_space<vmem>>, %arg4: memref<128x128xbf16, #tpu.memory_space<vmem>>, %arg5: memref<1x128xf32, #tpu.memory_space<vmem>>, %arg6: memref<128x128xbf16, #tpu.memory_space<vmem>>, %arg7: memref<1x128xf32, #tpu.memory_space<vmem>>, %arg8: memref<128x128xbf16, #tpu.memory_space<vmem>>, %arg9: memref<2xf32, #tpu.memory_space<smem>>, %arg10: memref<16x128xf32, #tpu.memory_space<vmem>>) attributes {dimension_semantics = [#tpu.dimension_semantics<parallel>], iteration_bounds = array<i64: 1>, scalar_prefetch = 0 : i64, scratch_operands = 0 : i64, tpu.core_type = #tpu.core_type<tc>, window_params = [{transform_indices = @transform_0, window_bounds = array<i64: 16, 16>}, {pipeline_mode = #tpu.pipeline_mode<synchronous>, transform_indices = @transform_1, window_bounds = array<i64: 16, 128>}, {transform_indices = @transform_2, window_bounds = array<i64: 16, 128>}, {pipeline_mode = #tpu.pipeline_mode<synchronous>, transform_indices = @transform_3, window_bounds = array<i64: 128, 128>}, {pipeline_mode = #tpu.pipeline_mode<synchronous>, transform_indices = @transform_4, window_bounds = array<i64: 1, 128>}, {pipeline_mode = #tpu.pipeline_mode<synchronous>, transform_indices = @transform_5, window_bounds = array<i64: 128, 128>}, {pipeline_mode = #tpu.pipeline_mode<synchronous>, transform_indices = @transform_6, window_bounds = array<i64: 1, 128>}, {pipeline_mode = #tpu.pipeline_mode<synchronous>, transform_indices = @transform_7, window_bounds = array<i64: 128, 128>}, {transform_indices = @transform_8, window_bounds = array<i64: 2>}, {transform_indices = @transform_9, window_bounds = array<i64: 16, 128>}]} {
    %c0 = arith.constant 0 : index
    %c0_0 = arith.constant 0 : index
    %0 = vector.load %arg3[%c0, %c0_0] : memref<16x128xf32, #tpu.memory_space<vmem>>, vector<16x128xf32>
    %c0_1 = arith.constant 0 : index
    %c0_2 = arith.constant 0 : index
    %1 = vector.load %arg1[%c0_1, %c0_2] : memref<16x16xbf16, #tpu.memory_space<vmem>>, vector<16x16xbf16>
    %c0_3 = arith.constant 0 : index
    %c0_4 = arith.constant 0 : index
    %2 = vector.load %arg2[%c0_3, %c0_4] : memref<16x128xbf16, #tpu.memory_space<vmem>>, vector<16x128xbf16>
    %cst = arith.constant dense<0.000000e+00> : vector<16x128xf32>
    %3 = tpu.matmul %1, %2, %cst {dimension_numbers = #tpu.dot_dimension_numbers<[1], [0], [0], [1], [0, 0, 1, 1], [], []>} : vector<16x16xbf16>, vector<16x128xbf16>, vector<16x128xf32> -> vector<16x128xf32>
    %cst_5 = arith.constant 1.000000e+00 : f32
    %4 = vector.broadcast %cst_5 : f32 to vector<16x128xf32>
    %5 = arith.mulf %4, %0 : vector<16x128xf32>
    %6 = arith.addf %5, %3 : vector<16x128xf32>
    %7 = arith.truncf %6 : vector<16x128xf32> to vector<16x128xbf16>
    %c0_6 = arith.constant 0 : index
    %c0_7 = arith.constant 0 : index
    %8 = vector.load %arg4[%c0_6, %c0_7] : memref<128x128xbf16, #tpu.memory_space<vmem>>, vector<128x128xbf16>
    %cst_8 = arith.constant dense<0.000000e+00> : vector<16x128xf32>
    %9 = tpu.matmul %7, %8, %cst_8 {dimension_numbers = #tpu.dot_dimension_numbers<[1], [0], [0], [1], [0, 0, 1, 1], [], []>} : vector<16x128xbf16>, vector<128x128xbf16>, vector<16x128xf32> -> vector<16x128xf32>
    %c0_9 = arith.constant 0 : index
    %c0_10 = arith.constant 0 : index
    %10 = vector.load %arg5[%c0_9, %c0_10] : memref<1x128xf32, #tpu.memory_space<vmem>>, vector<1x128xf32>
    %11 = vector.broadcast %10 : vector<1x128xf32> to vector<16x128xf32>
    %12 = arith.addf %9, %11 : vector<16x128xf32>
    %c0_11 = arith.constant 0 : index
    %13 = memref.load %arg9[%c0_11] : memref<2xf32, #tpu.memory_space<smem>>
    %cst_12 = arith.constant 0.000000e+00 : f32
    %14 = vector.broadcast %cst_12 : f32 to vector<16x128xf32>
    %15 = arith.cmpf oge, %12, %14 : vector<16x128xf32>
    %16 = vector.broadcast %13 : f32 to vector<16x128xf32>
    %17 = arith.mulf %16, %12 : vector<16x128xf32>
    %18 = arith.select %15, %12, %17 : vector<16x128xi1>, vector<16x128xf32>
    %19 = arith.truncf %18 : vector<16x128xf32> to vector<16x128xbf16>
    %c0_13 = arith.constant 0 : index
    %c0_14 = arith.constant 0 : index
    %20 = vector.load %arg6[%c0_13, %c0_14] : memref<128x128xbf16, #tpu.memory_space<vmem>>, vector<128x128xbf16>
    %cst_15 = arith.constant dense<0.000000e+00> : vector<16x128xf32>
    %21 = tpu.matmul %19, %20, %cst_15 {dimension_numbers = #tpu.dot_dimension_numbers<[1], [0], [0], [1], [0, 0, 1, 1], [], []>} : vector<16x128xbf16>, vector<128x128xbf16>, vector<16x128xf32> -> vector<16x128xf32>
    %c0_16 = arith.constant 0 : index
    %c0_17 = arith.constant 0 : index
    %22 = vector.load %arg7[%c0_16, %c0_17] : memref<1x128xf32, #tpu.memory_space<vmem>>, vector<1x128xf32>
    %23 = vector.broadcast %22 : vector<1x128xf32> to vector<16x128xf32>
    %24 = arith.addf %21, %23 : vector<16x128xf32>
    %c1 = arith.constant 1 : index
    %25 = memref.load %arg9[%c1] : memref<2xf32, #tpu.memory_space<smem>>
    %cst_18 = arith.constant 0.000000e+00 : f32
    %26 = vector.broadcast %cst_18 : f32 to vector<16x128xf32>
    %27 = arith.cmpf oge, %24, %26 : vector<16x128xf32>
    %28 = vector.broadcast %25 : f32 to vector<16x128xf32>
    %29 = arith.mulf %28, %24 : vector<16x128xf32>
    %30 = arith.select %27, %24, %29 : vector<16x128xi1>, vector<16x128xf32>
    %31 = arith.truncf %0 : vector<16x128xf32> to vector<16x128xbf16>
    %c0_19 = arith.constant 0 : index
    %c0_20 = arith.constant 0 : index
    %32 = vector.load %arg8[%c0_19, %c0_20] : memref<128x128xbf16, #tpu.memory_space<vmem>>, vector<128x128xbf16>
    %cst_21 = arith.constant dense<0.000000e+00> : vector<16x128xf32>
    %33 = tpu.matmul %31, %32, %cst_21 {dimension_numbers = #tpu.dot_dimension_numbers<[1], [0], [0], [1], [0, 0, 1, 1], [], []>} : vector<16x128xbf16>, vector<128x128xbf16>, vector<16x128xf32> -> vector<16x128xf32>
    %34 = arith.addf %30, %33 : vector<16x128xf32>
    %c0_22 = arith.constant 0 : index
    %c0_23 = arith.constant 0 : index
    %35 = vector.load %arg10[%c0_22, %c0_23] : memref<16x128xf32, #tpu.memory_space<vmem>>, vector<16x128xf32>
    tpu.vector_store %arg10[%c0_22, %c0_23], %34 {strides = array<i32>} : memref<16x128xf32, #tpu.memory_space<vmem>>, vector<16x128xf32>,
    return
  }
  func.func @transform_0(%arg0: i32) -> (i32, i32) {
    %c0_i32 = arith.constant 0 : i32
    %c0_i32_0 = arith.constant 0 : i32
    return %arg0, %c0_i32 : i32, i32
  }
  func.func @transform_1(%arg0: i32) -> (i32, i32) {
    %c0_i32 = arith.constant 0 : i32
    %c0_i32_0 = arith.constant 0 : i32
    %c0_i32_1 = arith.constant 0 : i32
    return %c0_i32, %c0_i32_0 : i32, i32
  }
  func.func @transform_2(%arg0: i32) -> (i32, i32) {
    %c0_i32 = arith.constant 0 : i32
    %c0_i32_0 = arith.constant 0 : i32
    return %arg0, %c0_i32 : i32, i32
  }
  func.func @transform_3(%arg0: i32) -> (i32, i32) {
    %c0_i32 = arith.constant 0 : i32
    %c0_i32_0 = arith.constant 0 : i32
    %c0_i32_1 = arith.constant 0 : i32
    return %c0_i32, %c0_i32_0 : i32, i32
  }
  func.func @transform_4(%arg0: i32) -> (i32, i32) {
    %c0_i32 = arith.constant 0 : i32
    %c0_i32_0 = arith.constant 0 : i32
    %c0_i32_1 = arith.constant 0 : i32
    return %c0_i32, %c0_i32_0 : i32, i32
  }
  func.func @transform_5(%arg0: i32) -> (i32, i32) {
    %c0_i32 = arith.constant 0 : i32
    %c0_i32_0 = arith.constant 0 : i32
    %c0_i32_1 = arith.constant 0 : i32
    return %c0_i32, %c0_i32_0 : i32, i32
  }
  func.func @transform_6(%arg0: i32) -> (i32, i32) {
    %c0_i32 = arith.constant 0 : i32
    %c0_i32_0 = arith.constant 0 : i32
    %c0_i32_1 = arith.constant 0 : i32
    return %c0_i32, %c0_i32_0 : i32, i32
  }
  func.func @transform_7(%arg0: i32) -> (i32, i32) {
    %c0_i32 = arith.constant 0 : i32
    %c0_i32_0 = arith.constant 0 : i32
    %c0_i32_1 = arith.constant 0 : i32
    return %c0_i32, %c0_i32_0 : i32, i32
  }
  func.func @transform_8(%arg0: i32) -> i32 {
    %c0_i32 = arith.constant 0 : i32
    %c0_i32_0 = arith.constant 0 : i32
    return %c0_i32 : i32
  }
  func.func @transform_9(%arg0: i32) -> (i32, i32) {
    %c0_i32 = arith.constant 0 : i32
    %c0_i32_0 = arith.constant 0 : i32
    return %arg0, %c0_i32 : i32, i32
  }
}

module attributes {stable_mosaic.version = 11 : i64} {
  func.func @_log_softmax_kernel(%arg0: memref<4x16xf32, #tpu.memory_space<vmem>>, %arg1: memref<4x16xf32, #tpu.memory_space<vmem>>) attributes {dimension_semantics = [], scalar_prefetch = 0 : i64, scratch_operands = 0 : i64, tpu.core_type = #tpu.core_type<tc>} {
    %c0 = arith.constant 0 : index
    %c0_0 = arith.constant 0 : index
    %0 = vector.load %arg0[%c0, %c0_0] : memref<4x16xf32, #tpu.memory_space<vmem>>, vector<4x16xf32>
    %cst = arith.constant dense<0xFF800000> : vector<4xf32>
    %1 = vector.multi_reduction <maximumf>, %0, %cst [1] : vector<4x16xf32> to vector<4xf32>
    %2 = vector.shape_cast %1 : vector<4xf32> to vector<4x1xf32>
    %3 = vector.broadcast %2 : vector<4x1xf32> to vector<4x16xf32>
    %4 = arith.subf %0, %3 : vector<4x16xf32>
    %5 = math.exp %4 : vector<4x16xf32>
    %cst_1 = arith.constant dense<0.000000e+00> : vector<4xf32>
    %6 = vector.multi_reduction <add>, %5, %cst_1 [1] : vector<4x16xf32> to vector<4xf32>
    %7 = vector.shape_cast %6 : vector<4xf32> to vector<4x1xf32>
    %8 = vector.broadcast %2 : vector<4x1xf32> to vector<4x16xf32>
    %9 = arith.subf %0, %8 : vector<4x16xf32>
    %10 = math.log %7 : vector<4x1xf32>
    %11 = vector.broadcast %10 : vector<4x1xf32> to vector<4x16xf32>
    %12 = arith.subf %9, %11 : vector<4x16xf32>
    %c0_2 = arith.constant 0 : index
    %c0_3 = arith.constant 0 : index
    %13 = vector.load %arg1[%c0_2, %c0_3] : memref<4x16xf32, #tpu.memory_space<vmem>>, vector<4x16xf32>
    tpu.vector_store %arg1[%c0_2, %c0_3], %12 {strides = array<i32>} : memref<4x16xf32, #tpu.memory_space<vmem>>, vector<4x16xf32>,
    return
  }
}

</mosaic_0001>

<bundles_post_ra>
// kernel: gin_np_forward.11
= control target key start
LH: loop header
LB: loop body
LE: loop exit
PB: predicated region body
PF: predicated region fallthrough
CT: control target
= control target key end

     0   :  { %vm10_vm0 = vcmask 125952   ;;  %s96_s0 = inlined_call_operand.vmem [shape: f32[4,16], index: 0, kind: input, shape index: {}]   ;;  %s97_s1 = inlined_call_operand.hbm [shape: f32[4,16], index: 1, kind: output, shape index: {}]  }
   0x1   :  { %v9_v0 = vld [vmem:[%s96_s0] sm:$0xf] }
   0x2   :  { %6 = vsyncpa [#allocation3], 0  ;;  %v11_v1 = vsel %vm10_vm0, %v9_v0, -inf  ;;  %s67_s8 = smov [#allocation2]  }
   0x3   :  { %12 = vmax.xlane.f32.xlu0 %v11_v1  ;;  %s30_s9 = sshll.u32 %s67_s8, 4  ;;  %s31_s9 = int_to_ptr.vmem [resolvable:$true] %s30_s9 }
   0x4   :  { %s43_s0 = scalar_lea.vmem %s31_s9, 64  ;;  %p48_p1 = scmp.lt.s32.totalorder %s31_s9, %s31_s9 }
   0x5   :  { %p44_p0 = scmp.ne.s32.totalorder %s31_s9, %s43_s0  ;;  %p49_p2 = scmp.lt.s32.totalorder %s43_s0, %s43_s0 }
   0x7   :  { %p50_p3 = por %p49_p2, %p48_p1 }
   0x9   :  { %p51_p4 = pnand %p50_p3, %p44_p0 }
  0x90   :  { %v13_v2 = vpop.xlane.xlu0 %12 }
  0x91   :  { %v14_v3 = vsub.f32 %v9_v0, %v13_v2 }
  0x93   :  { %v15_v4 = vmul.f32 1.442695, %v14_v3 }
  0x95   :  { %39 = vpow2.f32 %v15_v4 }
  0x9f   :  { %v40_v5 = vpop.eup %39 }
  0xa0   :  { %v17_v6 = vsel %vm10_vm0, %v40_v5, 0.0 }
  0xa1   :  { %18 = vadd.xlane.f32.xlu0 %v17_v6 }
 0x12e   :  { %v19_v7 = vpop.xlane.xlu0 %18 }
 0x12f   :  { %41 = vlog2.f32 %v19_v7 }
 0x139   :  { %v42_v8 = vpop.eup %41 }
 0x13a   :  { %v21_v9 = vmul.f32 0.6931472, %v42_v8 }
 0x13c   :  { %v22_v10 = vsub.f32 %v14_v3, %v21_v9 }
 0x13e   :  { %23 = vst.msk [vmem:[#allocation2] sm:$0xf] %vm10_vm0, %v22_v10 }
 0x13f   :  { %54 = shalt.err (!%p51_p4)
}
 0x140   :  { %s55_s12 = scalar_lea.hbm %s97_s1, 64 }
 0x141   :  { %p56_p5 = scmp.ne.s32.totalorder %s97_s1, %s55_s12  ;;  %p59_p6 = scmp.lt.u32.totalorder %s55_s12, %s97_s1 }
 0x143   :  { %p61_p7 = pnand %p59_p6, %p56_p5 }
 0x145   :  { %64 = shalt.err (!%p61_p7)
}
 0x146   :  { %33 = dma.vmem_to_hbm [thread:$0]  %s31_s9, 64, %s97_s1, [#allocation3]  }
 0x147   :  { %65 = dma.done.wait [#allocation3], 64  }
 0x148   :  { %66 = vsyncadd [#allocation3], 4294967232 }
 0x149   :  { %37 = vsyncpa [#allocation3], 1 }

// kernel: gin_np_forward.6
= control target key start
LH: loop header
LB: loop body
LE: loop exit
PB: predicated region body
PF: predicated region fallthrough
CT: control target
= control target key end

     0   :  { %13 = vsyncpa [#allocation3], 0  ;;  %s624_s0 = inlined_call_operand.vmem [shape: bf16[16,16], index: 0, kind: input, shape index: {}]   ;;  %s625_s1 = inlined_call_operand.vmem [shape: bf16[16,128], index: 1, kind: input, shape index: {}]   ;;  %s626_s2 = inlined_call_operand.vmem [shape: f32[16,128], index: 2, kind: input, shape index: {}]   ;;  %s627_s3 = inlined_call_operand.vmem [shape: bf16[128,128], index: 3, kind: input, shape index: {}]   ;;  %s628_s4 = inlined_call_operand.vmem [shape: f32[1,128], index: 4, kind: input, shape index: {}]   ;;  %s629_s5 = inlined_call_operand.vmem [shape: bf16[128,128], index: 5, kind: input, shape index: {}]   ;;  %s630_s6 = inlined_call_operand.vmem [shape: f32[1,128], index: 6, kind: input, shape index: {}]   ;;  %s631_s7 = inlined_call_operand.vmem [shape: f32[2], index: 7, kind: input, shape index: {}]   ;;  %s632_s8 = inlined_call_operand.vmem [shape: f32[16,128], index: 8, kind: output, shape index: {}]  }
   0x1   :  { %s34_s29 = sshll.u32 %s631_s7, 4  ;;  %s35_s29 = int_to_ptr.vmem [resolvable:$true] %s34_s29 }
   0x2   :  { %s467_s30 = scalar_lea.vmem %s35_s29, 16  ;;  %p472_p1 = scmp.lt.s32.totalorder %s35_s29, %s35_s29 }
   0x3   :  { %p468_p0 = scmp.ne.s32.totalorder %s35_s29, %s467_s30  ;;  %p473_p2 = scmp.lt.s32.totalorder %s467_s30, %s467_s30 }
   0x5   :  { %p474_p3 = por %p473_p2, %p472_p1 }
   0x7   :  { %p475_p4 = pnand %p474_p3, %p468_p0 }
   0x9   :  { %478 = shalt.err (!%p475_p4)
}
   0xa   :  { %s481_s9 = smov [#allocation2]  }
   0xb   :  { %37 = dma.vmem_to_smem %s35_s29, 16, %s481_s9, [#allocation3]  }
   0xc   :  { %479 = dma.done.wait [#allocation3], 16  }
   0xd   :  { %480 = vsyncadd [#allocation3], 4294967280 }
   0xe   :  { %41 = sfence }
   0xf   :  { %v449_v0 = vld [vmem:[%s625_s1] sm:$0xff]   ;;  %v482_v1 = vmov 0.0   ;;  %vm483_vm0 = vmmov 0   ;;  %vm60_vm1 = vcmask 130048   ;;  %v452_v4 = vld [vmem:[%s627_s3 + $0x8] sm:$0xff]   ;;  %v453_v5 = vld [vmem:[%s627_s3 + $0x10] sm:$0xff]  }
  0x10   :  { %400 = vmatprep.subr.bf16.mxu0 %v482_v1  ;;  %v450_v2 = vld [vmem:[%s624_s0] sm:$0xff]   ;;  %406 = vmatprep.subr.bf16.mxu1 %v482_v1  ;;  %v454_v6 = vld [vmem:[%s627_s3 + $0x18] sm:$0xff]   ;;  %v456_v8 = vld [vmem:[%s627_s3 + $0x28] sm:$0xff]  }
  0x11   :  { %401 = vmatpush3.bf16.msra.mxu0 %v449_v0  ;;  %402 = vmatprep.mubr.msk.bf16.mxu0 %vm483_vm0, %v482_v1  ;;  %v451_v3 = vld [vmem:[%s627_s3] sm:$0xff]   ;;  %v457_v9 = vld [vmem:[%s627_s3 + $0x30] sm:$0xff]   ;;  %v458_v10 = vld [vmem:[%s627_s3 + $0x38] sm:$0xff]  }
  0x12   :  { %422 = vmatprep.mubr.msk.bf16.mxu1 %vm483_vm0, %v482_v1  ;;  %426 = vmatprep.subr.bf16.mxu0 %v482_v1  ;;  %v455_v7 = vld [vmem:[%s627_s3 + $0x20] sm:$0xff]   ;;  %v460_v12 = vld [vmem:[%s629_s5 + $0x8] sm:$0xff]   ;;  %v461_v13 = vld [vmem:[%s629_s5 + $0x10] sm:$0xff]  }
  0x13   :  { %407 = vmatpush3.bf16.msra.mxu1 %v451_v3  ;;  %v459_v11 = vld [vmem:[%s629_s5] sm:$0xff]   ;;  %v462_v14 = vld [vmem:[%s629_s5 + $0x18] sm:$0xff]   ;;  %v464_v16 = vld [vmem:[%s629_s5 + $0x28] sm:$0xff]  }
  0x14   :  { %403 = vmatmul.mubr.msk.bf16.vlgmr.msra.gmra.mrb[0].mxu0 %vm60_vm1, %v450_v2  ;;  %408 = vmatprep.subr.bf16.mxu1 %v482_v1  ;;  %v463_v15 = vld [vmem:[%s629_s5 + $0x20] sm:$0xff]   ;;  %v44_v19 = vld [vmem:[%s626_s2 + $0x8] sm:$0xff]  ;;  %v465_v26 = vld [vmem:[%s629_s5 + $0x30] sm:$0xff]  }
  0x15   :  { %442 = vmatprep.mubr.msk.bf16.mxu0 %vm483_vm0, %v482_v1  ;;  %427 = vmatpush3.bf16.msra.mxu0 %v459_v11  ;;  %v43_v17 = vld [vmem:[%s626_s2] sm:$0xff]  ;;  %v466_v27 = vld [vmem:[%s629_s5 + $0x38] sm:$0xff]   ;;  %s220_s2 = sld [smem:[#allocation2]]  ;;  %s379_s5 = sld [smem:[#allocation2 + $0x1]] }
  0x16   :  { %428 = vmatprep.subr.bf16.mxu0 %v482_v1  ;;  %v361_v28 = vld [vmem:[%s628_s4] ss:$0 sm:$0xff] }
  0x17   :  { %409 = vmatpush3.bf16.msra.mxu1 %v452_v4  ;;  %v370_v41 = vld [vmem:[%s630_s6] ss:$0 sm:$0xff] }
  0x18   :  { %410 = vmatprep.subr.bf16.mxu1 %v482_v1 }
  0x19   :  { %429 = vmatpush3.bf16.msra.mxu0 %v460_v12 }
  0x1a   :  { %430 = vmatprep.subr.bf16.mxu0 %v482_v1 }
  0x1b   :  { %411 = vmatpush3.bf16.msra.mxu1 %v453_v5  ;;  %v223_v30 = vstv %s220_s2  ;;  %v344_v43 = vstv %s379_s5 }
  0x1c   :  { %412 = vmatprep.subr.bf16.mxu1 %v482_v1 }
  0x1d   :  { %431 = vmatpush3.bf16.msra.mxu0 %v461_v13 }
  0x1e   :  { %432 = vmatprep.subr.bf16.mxu0 %v482_v1 }
  0x1f   :  { %413 = vmatpush3.bf16.msra.mxu1 %v454_v6 }
  0x20   :  { %414 = vmatprep.subr.bf16.mxu1 %v482_v1 }
  0x21   :  { %433 = vmatpush3.bf16.msra.mxu0 %v462_v14 }
  0x22   :  { %434 = vmatprep.subr.bf16.mxu0 %v482_v1 }
  0x23   :  { %415 = vmatpush3.bf16.msra.mxu1 %v455_v7 }
  0x24   :  { %416 = vmatprep.subr.bf16.mxu1 %v482_v1 }
  0x25   :  { %435 = vmatpush3.bf16.msra.mxu0 %v463_v15 }
  0x26   :  { %436 = vmatprep.subr.bf16.mxu0 %v482_v1 }
  0x27   :  { %417 = vmatpush3.bf16.msra.mxu1 %v456_v8 }
  0x28   :  { %418 = vmatprep.subr.bf16.mxu1 %v482_v1 }
  0x29   :  { %437 = vmatpush3.bf16.msra.mxu0 %v464_v16 }
  0x2a   :  { %438 = vmatprep.subr.bf16.mxu0 %v482_v1 }
  0x2b   :  { %419 = vmatpush3.bf16.msra.mxu1 %v457_v9 }
  0x2c   :  { %420 = vmatprep.subr.bf16.mxu1 %v482_v1 }
  0x2d   :  { %439 = vmatpush3.bf16.msra.mxu0 %v465_v26 }
  0x2e   :  { %440 = vmatprep.subr.bf16.mxu0 %v482_v1 }
  0x2f   :  { %421 = vmatpush3.bf16.msra.mxu1 %v458_v10 }
  0x31   :  { %441 = vmatpush3.bf16.msra.mxu0 %v466_v27 }
  0xe7   :  { %v98_v18 = vpop.f32.mrb[0].mxu0 }
  0xe8   :  { %v404_v20 = vpop.f32.mrb[1].mxu0  ;;  %v105_v22 = vadd.f32 %v98_v18, %v43_v17 }
  0xe9   :  { %v101_v21 = vpop.f32.mrb[2].mxu0 }
  0xea   :  { %v106_v23 = vadd.f32 %v101_v21, %v44_v19  ;;  %v405_v24 = vpop.f32.mrb[3].mxu0 }
  0xec   :  { %v107_v25 = vpack.c.bf16 %v106_v23, %v105_v22 }
  0xee   :  { %423 = vmatmul.mubr.bf16.vlgmr.msra.gmra.mrb[0].mxu1 %v107_v25 }
 0x1c1   :  { %v213_v29 = vpop.f32.mrb[0].mxu1 }
 0x1c2   :  { %v214_v31 = vadd.f32 %v361_v28, %v213_v29  ;;  %v424_v32 = vpop.f32.mrb[1].mxu1 }
 0x1c3   :  { %v216_v33 = vpop.f32.mrb[2].mxu1 }
 0x1c4   :  { %v224_v34 = vmul.f32 %v223_v30, %v214_v31  ;;  %v217_v35 = vadd.f32 %v361_v28, %v216_v33  ;;  %v425_v36 = vpop.f32.mrb[3].mxu1  ;;  %vm221_vm2 = vcmp.ge.f32.partialorder %v214_v31, 0.0 }
 0x1c6   :  { %vm222_vm3 = vcmp.ge.f32.partialorder %v217_v35, 0.0  ;;  %v225_v37 = vmul.f32 %v223_v30, %v217_v35  ;;  %v226_v38 = vsel %vm221_vm2, %v214_v31, %v224_v34 }
 0x1c8   :  { %v227_v39 = vsel %vm222_vm3, %v217_v35, %v225_v37 }
 0x1c9   :  { %v228_v40 = vpack.c.bf16 %v227_v39, %v226_v38 }
 0x1cb   :  { %443 = vmatmul.mubr.bf16.vlgmr.msra.gmra.mrb[4].mxu0 %v228_v40 }
 0x29e   :  { %v334_v42 = vpop.f32.mrb[4].mxu0 }
 0x29f   :  { %v335_v44 = vadd.f32 %v370_v41, %v334_v42  ;;  %v444_v45 = vpop.f32.mrb[5].mxu0 }
 0x2a0   :  { %v337_v46 = vpop.f32.mrb[6].mxu0 }
 0x2a1   :  { %vm342_vm4 = vcmp.ge.f32.partialorder %v335_v44, 0.0  ;;  %v345_v47 = vmul.f32 %v344_v43, %v335_v44  ;;  %v338_v48 = vadd.f32 %v370_v41, %v337_v46  ;;  %v445_v49 = vpop.f32.mrb[7].mxu0 }
 0x2a3   :  { %v347_v50 = vsel %vm342_vm4, %v335_v44, %v345_v47  ;;  %vm343_vm5 = vcmp.ge.f32.partialorder %v338_v48, 0.0  ;;  %v346_v51 = vmul.f32 %v344_v43, %v338_v48 }
 0x2a4   :  { %v349_v52 = vadd.f32 %v347_v50, %v43_v17 }
 0x2a5   :  { %v348_v53 = vsel %vm343_vm5, %v338_v48, %v346_v51 }
 0x2a6   :  { %351 = vst [vmem:[%s632_s8] sm:$0xff] %v349_v52  ;;  %v350_v54 = vadd.f32 %v348_v53, %v44_v19 }
 0x2a8   :  { %352 = vst [vmem:[%s632_s8 + $0x8] sm:$0xff] %v350_v54 }
 0x2a9   :  { %357 = vsyncpa [#allocation3], 1 }

// kernel: gin_np_forward.10
= control target key start
LH: loop header
LB: loop body
LE: loop exit
PB: predicated region body
PF: predicated region fallthrough
CT: control target
= control target key end

     0   :  { %14 = vsyncpa [#allocation3], 0  ;;  %s820_s0 = inlined_call_operand.vmem [shape: bf16[16,16], index: 0, kind: input, shape index: {}]   ;;  %s821_s1 = inlined_call_operand.vmem [shape: bf16[16,128], index: 1, kind: input, shape index: {}]   ;;  %s822_s2 = inlined_call_operand.vmem [shape: f32[16,128], index: 2, kind: input, shape index: {}]   ;;  %s823_s3 = inlined_call_operand.vmem [shape: bf16[128,128], index: 3, kind: input, shape index: {}]   ;;  %s824_s4 = inlined_call_operand.vmem [shape: f32[1,128], index: 4, kind: input, shape index: {}]   ;;  %s825_s5 = inlined_call_operand.vmem [shape: bf16[128,128], index: 5, kind: input, shape index: {}]   ;;  %s826_s6 = inlined_call_operand.vmem [shape: f32[1,128], index: 6, kind: input, shape index: {}]   ;;  %s827_s7 = inlined_call_operand.vmem [shape: bf16[128,128], index: 7, kind: input, shape index: {}]   ;;  %s828_s8 = inlined_call_operand.vmem [shape: f32[2], index: 8, kind: input, shape index: {}]   ;;  %s829_s9 = inlined_call_operand.vmem [shape: f32[16,128], index: 9, kind: output, shape index: {}]  }
   0x1   :  { %s37_s11 = sshll.u32 %s828_s8, 4  ;;  %s38_s11 = int_to_ptr.vmem [resolvable:$true] %s37_s11 }
   0x2   :  { %s621_s12 = scalar_lea.vmem %s38_s11, 16  ;;  %p626_p1 = scmp.lt.s32.totalorder %s38_s11, %s38_s11 }
   0x3   :  { %p622_p0 = scmp.ne.s32.totalorder %s38_s11, %s621_s12  ;;  %p627_p2 = scmp.lt.s32.totalorder %s621_s12, %s621_s12 }
   0x5   :  { %p628_p3 = por %p627_p2, %p626_p1 }
   0x7   :  { %p629_p4 = pnand %p628_p3, %p622_p0 }
   0x9   :  { %632 = shalt.err (!%p629_p4)
}
   0xa   :  { %s635_s13 = smov [#allocation2]  }
   0xb   :  { %40 = dma.vmem_to_smem %s38_s11, 16, %s635_s13, [#allocation3]  }
   0xc   :  { %633 = dma.done.wait [#allocation3], 16  }
   0xd   :  { %634 = vsyncadd [#allocation3], 4294967280 }
   0xe   :  { %44 = sfence }
   0xf   :  { %v595_v0 = vld [vmem:[%s821_s1] sm:$0xff]   ;;  %v636_v1 = vmov 0.0   ;;  %vm637_vm0 = vmmov 0   ;;  %vm63_vm1 = vcmask 130048   ;;  %v598_v4 = vld [vmem:[%s823_s3 + $0x8] sm:$0xff]   ;;  %v599_v5 = vld [vmem:[%s823_s3 + $0x10] sm:$0xff]  }
  0x10   :  { %526 = vmatprep.subr.bf16.mxu0 %v636_v1  ;;  %v596_v2 = vld [vmem:[%s820_s0] sm:$0xff]   ;;  %532 = vmatprep.subr.bf16.mxu1 %v636_v1  ;;  %v600_v6 = vld [vmem:[%s823_s3 + $0x18] sm:$0xff]   ;;  %v602_v8 = vld [vmem:[%s823_s3 + $0x28] sm:$0xff]   ;;  %s223_s18 = sld [smem:[#allocation2]] }
  0x11   :  { %527 = vmatpush3.bf16.msra.mxu0 %v595_v0  ;;  %528 = vmatprep.mubr.msk.bf16.mxu0 %vm637_vm0, %v636_v1  ;;  %v597_v3 = vld [vmem:[%s823_s3] sm:$0xff]   ;;  %v603_v9 = vld [vmem:[%s823_s3 + $0x30] sm:$0xff]   ;;  %v604_v10 = vld [vmem:[%s823_s3 + $0x38] sm:$0xff]  }
  0x12   :  { %548 = vmatprep.mubr.msk.bf16.mxu1 %vm637_vm0, %v636_v1  ;;  %552 = vmatprep.subr.bf16.mxu0 %v636_v1  ;;  %v601_v7 = vld [vmem:[%s823_s3 + $0x20] sm:$0xff]   ;;  %v607_v12 = vld [vmem:[%s825_s5 + $0x8] sm:$0xff]   ;;  %v609_v13 = vld [vmem:[%s825_s5 + $0x10] sm:$0xff]  }
  0x13   :  { %533 = vmatpush3.bf16.msra.mxu1 %v597_v3  ;;  %v605_v11 = vld [vmem:[%s825_s5] sm:$0xff]   ;;  %v611_v14 = vld [vmem:[%s825_s5 + $0x18] sm:$0xff]   ;;  %v615_v16 = vld [vmem:[%s825_s5 + $0x28] sm:$0xff]  }
  0x14   :  { %529 = vmatmul.mubr.msk.bf16.vlgmr.msra.gmra.mrb[0].mxu0 %vm63_vm1, %v596_v2  ;;  %534 = vmatprep.subr.bf16.mxu1 %v636_v1  ;;  %v613_v15 = vld [vmem:[%s825_s5 + $0x20] sm:$0xff]   ;;  %v47_v19 = vld [vmem:[%s822_s2 + $0x8] sm:$0xff]  ;;  %v610_v28 = vld [vmem:[%s827_s7 + $0x10] sm:$0xff]  }
  0x15   :  { %568 = vmatprep.mubr.msk.bf16.mxu0 %vm637_vm0, %v636_v1  ;;  %553 = vmatpush3.bf16.msra.mxu0 %v605_v11  ;;  %v46_v17 = vld [vmem:[%s822_s2] sm:$0xff]  ;;  %v608_v27 = vld [vmem:[%s827_s7 + $0x8] sm:$0xff]   ;;  %v612_v29 = vld [vmem:[%s827_s7 + $0x18] sm:$0xff]  }
  0x16   :  { %554 = vmatprep.subr.bf16.mxu0 %v636_v1  ;;  %v606_v25 = vld [vmem:[%s827_s7] sm:$0xff]   ;;  %v616_v31 = vld [vmem:[%s827_s7 + $0x28] sm:$0xff]   ;;  %v617_v32 = vld [vmem:[%s825_s5 + $0x30] sm:$0xff]   ;;  %v352_v36 = vpack.c.bf16 %v47_v19, %v46_v17  ;;  %v226_v39 = vstv %s223_s18 }
  0x17   :  { %535 = vmatpush3.bf16.msra.mxu1 %v598_v4  ;;  %v614_v30 = vld [vmem:[%s827_s7 + $0x20] sm:$0xff]   ;;  %v618_v33 = vld [vmem:[%s827_s7 + $0x30] sm:$0xff]   ;;  %v619_v34 = vld [vmem:[%s825_s5 + $0x38] sm:$0xff]  }
  0x18   :  { %536 = vmatprep.subr.bf16.mxu1 %v636_v1  ;;  %v620_v35 = vld [vmem:[%s827_s7 + $0x38] sm:$0xff]   ;;  %v470_v37 = vld [vmem:[%s824_s4] ss:$0 sm:$0xff]  ;;  %s488_s4 = sld [smem:[#allocation2 + $0x1]] }
  0x19   :  { %555 = vmatpush3.bf16.msra.mxu0 %v607_v12  ;;  %v479_v54 = vld [vmem:[%s826_s6] ss:$0 sm:$0xff] }
  0x1a   :  { %556 = vmatprep.subr.bf16.mxu0 %v636_v1 }
  0x1b   :  { %537 = vmatpush3.bf16.msra.mxu1 %v599_v5 }
  0x1c   :  { %538 = vmatprep.subr.bf16.mxu1 %v636_v1 }
  0x1d   :  { %557 = vmatpush3.bf16.msra.mxu0 %v609_v13 }
  0x1e   :  { %558 = vmatprep.subr.bf16.mxu0 %v636_v1  ;;  %v347_v56 = vstv %s488_s4 }
  0x1f   :  { %539 = vmatpush3.bf16.msra.mxu1 %v600_v6 }
  0x20   :  { %540 = vmatprep.subr.bf16.mxu1 %v636_v1 }
  0x21   :  { %559 = vmatpush3.bf16.msra.mxu0 %v611_v14 }
  0x22   :  { %560 = vmatprep.subr.bf16.mxu0 %v636_v1 }
  0x23   :  { %541 = vmatpush3.bf16.msra.mxu1 %v601_v7 }
  0x24   :  { %542 = vmatprep.subr.bf16.mxu1 %v636_v1 }
  0x25   :  { %561 = vmatpush3.bf16.msra.mxu0 %v613_v15 }
  0x26   :  { %562 = vmatprep.subr.bf16.mxu0 %v636_v1 }
  0x27   :  { %543 = vmatpush3.bf16.msra.mxu1 %v602_v8 }
  0x28   :  { %544 = vmatprep.subr.bf16.mxu1 %v636_v1 }
  0x29   :  { %563 = vmatpush3.bf16.msra.mxu0 %v615_v16 }
  0x2a   :  { %564 = vmatprep.subr.bf16.mxu0 %v636_v1 }
  0x2b   :  { %545 = vmatpush3.bf16.msra.mxu1 %v603_v9 }
  0x2c   :  { %546 = vmatprep.subr.bf16.mxu1 %v636_v1 }
  0x2d   :  { %565 = vmatpush3.bf16.msra.mxu0 %v617_v32 }
  0x2e   :  { %566 = vmatprep.subr.bf16.mxu0 %v636_v1 }
  0x2f   :  { %547 = vmatpush3.bf16.msra.mxu1 %v604_v10 }
  0x30   :  { %572 = vmatprep.subr.bf16.mxu1 %v636_v1 }
  0x31   :  { %567 = vmatpush3.bf16.msra.mxu0 %v619_v34 }
  0xe7   :  { %v101_v18 = vpop.f32.mrb[0].mxu0 }
  0xe8   :  { %v530_v20 = vpop.f32.mrb[1].mxu0  ;;  %v108_v22 = vadd.f32 %v101_v18, %v46_v17 }
  0xe9   :  { %v104_v21 = vpop.f32.mrb[2].mxu0 }
  0xea   :  { %v109_v23 = vadd.f32 %v104_v21, %v47_v19  ;;  %v531_v24 = vpop.f32.mrb[3].mxu0 }
  0xec   :  { %v110_v26 = vpack.c.bf16 %v109_v23, %v108_v22 }
  0xee   :  { %549 = vmatmul.mubr.bf16.vlgmr.msra.gmra.mrb[0].mxu1 %v110_v26 }
  0xef   :  { %573 = vmatpush3.bf16.msra.mxu1 %v606_v25  ;;  %588 = vmatprep.mubr.msk.bf16.mxu1 %vm637_vm0, %v636_v1 }
  0xf0   :  { %574 = vmatprep.subr.bf16.mxu1 %v636_v1 }
  0xf3   :  { %575 = vmatpush3.bf16.msra.mxu1 %v608_v27 }
  0xf4   :  { %576 = vmatprep.subr.bf16.mxu1 %v636_v1 }
  0xf7   :  { %577 = vmatpush3.bf16.msra.mxu1 %v610_v28 }
  0xf8   :  { %578 = vmatprep.subr.bf16.mxu1 %v636_v1 }
  0xfb   :  { %579 = vmatpush3.bf16.msra.mxu1 %v612_v29 }
  0xfc   :  { %580 = vmatprep.subr.bf16.mxu1 %v636_v1 }
  0xff   :  { %581 = vmatpush3.bf16.msra.mxu1 %v614_v30 }
 0x100   :  { %582 = vmatprep.subr.bf16.mxu1 %v636_v1 }
 0x103   :  { %583 = vmatpush3.bf16.msra.mxu1 %v616_v31 }
 0x104   :  { %584 = vmatprep.subr.bf16.mxu1 %v636_v1 }
 0x107   :  { %585 = vmatpush3.bf16.msra.mxu1 %v618_v33 }
 0x108   :  { %586 = vmatprep.subr.bf16.mxu1 %v636_v1 }
 0x10b   :  { %587 = vmatpush3.bf16.msra.mxu1 %v620_v35 }
 0x10e   :  { %589 = vmatmul.mubr.bf16.vlgmr.msra.gmra.mrb[4].mxu1 %v352_v36 }
 0x1c1   :  { %v216_v38 = vpop.f32.mrb[0].mxu1 }
 0x1c2   :  { %v217_v40 = vadd.f32 %v470_v37, %v216_v38  ;;  %v550_v41 = vpop.f32.mrb[1].mxu1 }
 0x1c3   :  { %v219_v42 = vpop.f32.mrb[2].mxu1 }
 0x1c4   :  { %v227_v43 = vmul.f32 %v226_v39, %v217_v40  ;;  %v220_v44 = vadd.f32 %v470_v37, %v219_v42  ;;  %v551_v45 = vpop.f32.mrb[3].mxu1  ;;  %vm224_vm2 = vcmp.ge.f32.partialorder %v217_v40, 0.0 }
 0x1c6   :  { %vm225_vm3 = vcmp.ge.f32.partialorder %v220_v44, 0.0  ;;  %v228_v46 = vmul.f32 %v226_v39, %v220_v44  ;;  %v229_v47 = vsel %vm224_vm2, %v217_v40, %v227_v43 }
 0x1c8   :  { %v230_v48 = vsel %vm225_vm3, %v220_v44, %v228_v46 }
 0x1c9   :  { %v231_v49 = vpack.c.bf16 %v230_v48, %v229_v47 }
 0x1cb   :  { %569 = vmatmul.mubr.bf16.vlgmr.msra.gmra.mrb[4].mxu0 %v231_v49 }
 0x1e1   :  { %v451_v50 = vpop.f32.mrb[4].mxu1 }
 0x1e2   :  { %v590_v51 = vpop.f32.mrb[5].mxu1 }
 0x1e3   :  { %v454_v52 = vpop.f32.mrb[6].mxu1 }
 0x1e4   :  { %v591_v53 = vpop.f32.mrb[7].mxu1 }
 0x29e   :  { %v337_v55 = vpop.f32.mrb[4].mxu0 }
 0x29f   :  { %v338_v57 = vadd.f32 %v479_v54, %v337_v55  ;;  %v570_v58 = vpop.f32.mrb[5].mxu0 }
 0x2a0   :  { %v340_v59 = vpop.f32.mrb[6].mxu0 }
 0x2a1   :  { %v348_v60 = vmul.f32 %v347_v56, %v338_v57  ;;  %v341_v61 = vadd.f32 %v479_v54, %v340_v59  ;;  %vm345_vm4 = vcmp.ge.f32.partialorder %v338_v57, 0.0  ;;  %v571_v62 = vpop.f32.mrb[7].mxu0 }
 0x2a3   :  { %v349_v63 = vmul.f32 %v347_v56, %v341_v61  ;;  %v350_v0 = vsel %vm345_vm4, %v338_v57, %v348_v60  ;;  %vm346_vm5 = vcmp.ge.f32.partialorder %v341_v61, 0.0 }
 0x2a4   :  { %v458_v1 = vadd.f32 %v451_v50, %v350_v0 }
 0x2a5   :  { %v351_v2 = vsel %vm346_vm5, %v341_v61, %v349_v63 }
 0x2a6   :  { %460 = vst [vmem:[%s829_s9] sm:$0xff] %v458_v1  ;;  %v459_v3 = vadd.f32 %v454_v52, %v351_v2 }
 0x2a8   :  { %461 = vst [vmem:[%s829_s9 + $0x8] sm:$0xff] %v459_v3 }
 0x2a9   :  { %466 = vsyncpa [#allocation3], 1 }

</bundles_post_ra>
